<compile_context>
chip_gen: v5e
topology: v5e:2x2
jax: 0.10.0
libtpu: 0.0.40
codegen_flags: <defaults>
</compile_context>

<pallas_src>
import jax
import jax.numpy as jnp
from jax.experimental import pallas as pl
from jax.experimental.pallas import tpu as pltpu


def _mish_kernel(x_ref, o_ref):
    # Upcast for the transcendental math; I/O stays in the input dtype.
    x = x_ref[...].astype(jnp.float32)
    # tanh(softplus(x)) = ((1+e^x)^2 - 1) / ((1+e^x)^2 + 1) = 1 - 2/((1+e^x)^2 + 1)
    # Clamp so exp can't overflow: for x >= 20, tanh(softplus(x)) == 1 in f32.
    e = jnp.exp(jnp.minimum(x, 20.0))
    one_plus_e = 1.0 + e
    t = 1.0 - 2.0 / (one_plus_e * one_plus_e + 1.0)
    o_ref[...] = (x * t).astype(o_ref.dtype)


def mish(x: jax.Array, *, target_block_bytes: int = 2 * 1024 * 1024) -> jax.Array:
    """Mish(x) = x * tanh(softplus(x)), elementwise, any shape (float dtype)."""
    orig_shape = x.shape
    dtype = x.dtype
    n = int(x.size)
    if n == 0:
        return x

    itemsize = jnp.dtype(dtype).itemsize
    # Minimum sublane rows for packed tiling: f32 -> 8, bf16/f16 -> 16, int8/fp8 -> 32.
    sub = {4: 8, 2: 16, 1: 32}.get(itemsize, 8)
    lane = 128
    blk_elems = max(target_block_bytes // itemsize, sub * lane)

    flat = x.reshape(-1)

    # Pad only when unavoidable (n not a multiple of 128). mish(0) == 0 and the
    # padded tail is sliced off afterwards, so zero padding is numerically safe.
    pad = 0
    if n % lane != 0:
        pad = lane * sub - (n % (lane * sub))
        flat = jnp.pad(flat, (0, pad))
    n_eff = n + pad

    # Lane width L: largest multiple of 128 (<= 8192, <= one block) dividing n_eff.
    max_lane = (min(8192, blk_elems) // lane) * lane
    L = lane
    for cand in range(max_lane, lane - 1, -lane):
        if n_eff % cand == 0:
            L = cand
            break
    rows = n_eff // L
    slab = flat.reshape(rows, L)

    # Rows per block: ~target_block_bytes per block, multiple of `sub`.
    tr = max(blk_elems // L, sub)
    tr = (tr // sub) * sub
    if tr >= rows:
        tr = rows  # single block covering the full array (always a legal block)
    grid = (pl.cdiv(rows, tr),)

    out = pl.pallas_call(
        _mish_kernel,
        out_shape=jax.ShapeDtypeStruct((rows, L), dtype),
        grid_spec=pltpu.PrefetchScalarGridSpec(
            num_scalar_prefetch=0,
            grid=grid,
            in_specs=[pl.BlockSpec((tr, L), lambda i: (i, 0))],
            out_specs=pl.BlockSpec((tr, L), lambda i: (i, 0)),
        ),
        compiler_params=pltpu.CompilerParams(
            # Parallel grid axis: lets the two TensorCores on v7x split the loop.
            dimension_semantics=("parallel",),
        ),
    )(slab)

    out_flat = out.reshape(-1)
    if pad:
        out_flat = out_flat[:n]
    return out_flat.reshape(orig_shape)


if __name__ == "__main__":
    key = jax.random.PRNGKey(0)
    x = jax.random.normal(key, (2, 4, 16, 16), dtype=jnp.float32)  # NCHW

    y = mish(x)
    jax.block_until_ready(y)

    # Reference: plain-JAX numerically-stable softplus + tanh.
    sp_ref = jnp.maximum(x, 0.0) + jnp.log1p(jnp.exp(-jnp.abs(x)))
    y_ref = x * jnp.tanh(sp_ref)

    assert y.shape == x.shape and y.dtype == x.dtype
    assert jnp.allclose(y, y_ref, atol=1e-5, rtol=1e-5), float(
        jnp.max(jnp.abs(y - y_ref))
    )

    print("KERNEL_OK")
</pallas_src>

<mosaic_0001>
module attributes {stable_mosaic.version = 11 : i64} {
  func.func @_mish_kernel(%arg0: i32, %arg1: memref<1x2048xf32, #tpu.memory_space<vmem>>, %arg2: memref<1x2048xf32, #tpu.memory_space<vmem>>) attributes {dimension_semantics = [#tpu.dimension_semantics<parallel>], iteration_bounds = array<i64: 1>, scalar_prefetch = 0 : i64, scratch_operands = 0 : i64, tpu.core_type = #tpu.core_type<tc>, window_params = [{transform_indices = @transform_0, window_bounds = array<i64: 1, 2048>}, {transform_indices = @transform_1, window_bounds = array<i64: 1, 2048>}]} {
    %c0 = arith.constant 0 : index
    %c0_0 = arith.constant 0 : index
    %0 = vector.load %arg1[%c0, %c0_0] : memref<1x2048xf32, #tpu.memory_space<vmem>>, vector<1x2048xf32>
    %cst = arith.constant 2.000000e+01 : f32
    %1 = vector.broadcast %cst : f32 to vector<1x2048xf32>
    %2 = arith.minimumf %0, %1 : vector<1x2048xf32>
    %3 = math.exp %2 : vector<1x2048xf32>
    %cst_1 = arith.constant 1.000000e+00 : f32
    %4 = vector.broadcast %cst_1 : f32 to vector<1x2048xf32>
    %5 = arith.addf %4, %3 : vector<1x2048xf32>
    %6 = arith.mulf %5, %5 : vector<1x2048xf32>
    %cst_2 = arith.constant 1.000000e+00 : f32
    %7 = vector.broadcast %cst_2 : f32 to vector<1x2048xf32>
    %8 = arith.addf %6, %7 : vector<1x2048xf32>
    %cst_3 = arith.constant 2.000000e+00 : f32
    %9 = vector.broadcast %cst_3 : f32 to vector<1x2048xf32>
    %10 = arith.divf %9, %8 : vector<1x2048xf32>
    %cst_4 = arith.constant 1.000000e+00 : f32
    %11 = vector.broadcast %cst_4 : f32 to vector<1x2048xf32>
    %12 = arith.subf %11, %10 : vector<1x2048xf32>
    %13 = arith.mulf %0, %12 : vector<1x2048xf32>
    %c0_5 = arith.constant 0 : index
    %c0_6 = arith.constant 0 : index
    %14 = vector.load %arg2[%c0_5, %c0_6] : memref<1x2048xf32, #tpu.memory_space<vmem>>, vector<1x2048xf32>
    tpu.vector_store %arg2[%c0_5, %c0_6], %13 {strides = array<i32>} : memref<1x2048xf32, #tpu.memory_space<vmem>>, vector<1x2048xf32>,
    return
  }
  func.func @transform_0(%arg0: i32) -> (i32, i32) {
    %c0_i32 = arith.constant 0 : i32
    %c0_i32_0 = arith.constant 0 : i32
    return %arg0, %c0_i32 : i32, i32
  }
  func.func @transform_1(%arg0: i32) -> (i32, i32) {
    %c0_i32 = arith.constant 0 : i32
    %c0_i32_0 = arith.constant 0 : i32
    return %arg0, %c0_i32 : i32, i32
  }
}

</mosaic_0001>

<bundles_post_ra>
// kernel: tpu_custom_call.1
= control target key start
LH: loop header
LB: loop body
LE: loop exit
PB: predicated region body
PF: predicated region fallthrough
CT: control target
= control target key end

     0   :  { %6 = vsyncpa [#allocation3], 0  ;;  %s170_s0 = inlined_call_operand.hbm [shape: f32[1,2048], index: 0, kind: input, shape index: {}]   ;;  %s171_s1 = inlined_call_operand.hbm [shape: f32[1,2048], index: 1, kind: output, shape index: {}]  }
   0x1   :  { %7 = vsyncpa [#allocation4], 0  ;;  %s13_s8 = sshll.u32 %s170_s0, 4  ;;  %s152_s9 = smov [#allocation2]   ;;  %s14_s8 = int_to_ptr.hbm [resolvable:$true] %s13_s8 }
   0x2   :  { %s15_s10 = sshll.u32 %s152_s9, 4  ;;  %s16_s10 = int_to_ptr.vmem [resolvable:$true] %s15_s10 }
   0x3   :  { %18 = dma.hbm_to_vmem [thread:$0]  %s14_s8, 256, %s16_s10, [#allocation3]  }
   0x4   :  { %148 = dma.done.wait [#allocation3], 256  }
   0x5   :  { %149 = vsyncadd [#allocation3], 4294967040  ;;  %v23_v0 = vld [vmem:[#allocation2] sm:$0xff]  ;;  %v24_v1 = vld [vmem:[#allocation2 + $0x8] sm:$0xff]  ;;  %s153_s0 = smov [#allocation5]   ;;  %s80_s14 = sshll.u32 %s171_s1, 4  ;;  %s81_s14 = int_to_ptr.hbm [resolvable:$true] %s80_s14 }
   0x6   :  { %v25_v2 = vmin.f32 %v23_v0, 20.0  ;;  %v26_v3 = vmin.f32 %v24_v1, 20.0  ;;  %s78_s11 = sshll.u32 %s153_s0, 4  ;;  %s79_s11 = int_to_ptr.vmem [resolvable:$true] %s78_s11 }
   0x8   :  { %v27_v4 = vmul.f32 1.442695, %v25_v2  ;;  %v29_v5 = vmul.f32 1.442695, %v26_v3 }
   0xa   :  { %92 = vpow2.f32 %v27_v4 }
   0xb   :  { %94 = vpow2.f32 %v29_v5 }
  0x10   :  { %v93_v6 = vpop.eup %92 }
  0x11   :  { %v95_v7 = vpop.eup %94  ;;  %v31_v8 = vadd.f32 1.0, %v93_v6 }
  0x12   :  { %v32_v9 = vadd.f32 1.0, %v95_v7 }
  0x13   :  { %v33_v10 = vmul.f32 %v31_v8, %v31_v8 }
  0x14   :  { %v34_v11 = vmul.f32 %v32_v9, %v32_v9 }
  0x15   :  { %v35_v12 = vadd.f32 1.0, %v33_v10 }
  0x16   :  { %v36_v13 = vadd.f32 1.0, %v34_v11 }
  0x17   :  { %96 = vrcp.f32 %v35_v12  ;;  %vm42_vm0 = vweird.f32 %v35_v12  ;;  %v48_v17 = vand.u32 2147483648, %v35_v12  ;;  %v46_v20 = vand.u32 2147483647, %v35_v12 }
  0x18   :  { %98 = vrcp.f32 %v36_v13  ;;  %v63_v21 = vand.u32 2147483648, %v36_v13  ;;  %vm57_vm2 = vweird.f32 %v36_v13  ;;  %v61_v23 = vand.u32 2147483647, %v36_v13 }
  0x19   :  { %v49_v25 = vor.u32 1.1754944e-38, %v48_v17  ;;  %vm47_vm5 = vcmp.eq.f32.partialorder %v46_v20, 8.507059e+37 }
  0x1a   :  { %v64_v28 = vor.u32 1.1754944e-38, %v63_v21  ;;  %vm62_vm7 = vcmp.eq.f32.partialorder %v61_v23, 8.507059e+37 }
  0x1d   :  { %v97_v14 = vpop.eup %96 }
  0x1e   :  { %v99_v15 = vpop.eup %98  ;;  %v38_v16 = vmul.f32 %v97_v14, %v35_v12  ;;  %vm43_vm1 = vweird.f32 %v97_v14 }
  0x1f   :  { %v53_v18 = vmul.f32 %v99_v15, %v36_v13  ;;  %vm58_vm3 = vweird.f32 %v99_v15  ;;  %vm44_vm4 = vmor %vm42_vm0, %vm43_vm1 }
  0x20   :  { %v39_v19 = vsub.f32 1.0, %v38_v16  ;;  %vm59_vm6 = vmor %vm57_vm2, %vm58_vm3 }
  0x21   :  { %v54_v22 = vsub.f32 1.0, %v53_v18 }
  0x22   :  { %v40_v24 = vmul.f32 %v97_v14, %v39_v19 }
  0x23   :  { %v55_v26 = vmul.f32 %v99_v15, %v54_v22 }
  0x24   :  { %v41_v27 = vadd.f32 %v97_v14, %v40_v24 }
  0x25   :  { %v56_v29 = vadd.f32 %v99_v15, %v55_v26 }
  0x26   :  { %v45_v30 = vsel %vm44_vm4, %v97_v14, %v41_v27 }
  0x27   :  { %v50_v31 = vsel %vm47_vm5, %v49_v25, %v45_v30  ;;  %v60_v32 = vsel %vm59_vm6, %v99_v15, %v56_v29 }
  0x28   :  { %v51_v33 = vmul.f32 2.0, %v50_v31  ;;  %v65_v34 = vsel %vm62_vm7, %v64_v28, %v60_v32 }
  0x29   :  { %v66_v35 = vmul.f32 2.0, %v65_v34 }
  0x2a   :  { %v67_v36 = vsub.f32 1.0, %v51_v33 }
  0x2b   :  { %v68_v37 = vsub.f32 1.0, %v66_v35 }
  0x2c   :  { %v69_v38 = vmul.f32 %v67_v36, %v23_v0 }
  0x2d   :  { %v70_v39 = vmul.f32 %v68_v37, %v24_v1 }
  0x2e   :  { %71 = vst [vmem:[#allocation5] sm:$0xff] %v69_v38 }
  0x2f   :  { %72 = vst [vmem:[#allocation5 + $0x8] sm:$0xff] %v70_v39 }
  0x30   :  { %83 = dma.vmem_to_hbm [thread:$0]  %s79_s11, 256, %s81_s14, [#allocation4]  }
  0x31   :  { %150 = dma.done.wait [#allocation4], 256  }
  0x32   :  { %151 = vsyncadd [#allocation4], 4294967040 }
  0x33   :  { %88 = vsyncpa [#allocation3], 1 }
  0x34   :  { %89 = vsyncpa [#allocation4], 1 }

</bundles_post_ra>
